<compile_context>
chip_gen: v7x
topology: tpu7x:2x2x1
jax: 0.10.0
libtpu: 0.0.40
codegen_flags: <defaults>
</compile_context>

<pallas_src>
import jax
import jax.numpy as jnp
import numpy as np
from jax.experimental import pallas as pl
from jax.experimental.pallas import tpu as pltpu

NEG_SLOPE = 0.01  # F.leaky_relu default


def _round_up(n, m):
    return ((n + m - 1) // m) * m


def _leaky_relu(x):
    # For 0 < slope < 1: max(x, slope*x) == leaky_relu(x). One vmul + vmax.
    return jnp.maximum(x, NEG_SLOPE * x)


def policy_kernel(xt_ref,
                  w1_ref, b1_ref,
                  w2_ref, b2_ref,
                  w3_ref, b3_ref,
                  wmu_ref, bmu_ref,
                  out_ref):
    """Batch-in-lanes fused MLP.

    xt_ref : (4, TB)     transposed input tile (features on sublanes, batch on lanes)
    w*_ref : (out, in)   PyTorch-native weight layout
    b*_ref : (out, 1)
    out_ref: (2, TB)     transposed output tile
    """
    xt = xt_ref[...]                                   # (4, TB)
    w1 = w1_ref[...]                                   # (128, 4)

    # fc1: K=4 contraction as 4 VPU broadcast multiply-adds (skip MXU bubble).
    h = w1[:, 0:1] * xt[0:1, :]                        # (128, TB)
    for k in range(1, 4):
        h = h + w1[:, k:k + 1] * xt[k:k + 1, :]
    h = _leaky_relu(h + b1_ref[...])                   # (128, TB)

    # fc2: (64,128) @ (128,TB) on the MXU.
    h = jnp.dot(w2_ref[...], h, preferred_element_type=jnp.float32)
    h = _leaky_relu(h + b2_ref[...])                   # (64, TB)

    # fc3: (32,64) @ (64,TB)
    h = jnp.dot(w3_ref[...], h, preferred_element_type=jnp.float32)
    h = _leaky_relu(h + b3_ref[...])                   # (32, TB)

    # fc_mu: (2,32) @ (32,TB), then tanh (EUP).
    mu = jnp.dot(wmu_ref[...], h, preferred_element_type=jnp.float32)
    mu = mu + bmu_ref[...]                             # (2, TB)

    out_ref[...] = jnp.tanh(mu).astype(out_ref.dtype)


def policy_net_forward(x, params):
    """x: (B, 4) float32 -> real_action: (B, 2) float32.

    params: ((w1,b1),(w2,b2),(w3,b3),(wmu,bmu)) with w as (out, in), b as (out, 1).
    """
    (w1, b1), (w2, b2), (w3, b3), (wmu, bmu) = params
    B = x.shape[0]

    # Batch tile: lane-dense (multiple of 128), capped at 512 rows per step.
    TB = min(512, _round_up(max(B, 1), 128))
    B_pad = _round_up(B, TB)
    n_tiles = B_pad // TB

    xt = jnp.transpose(x)                              # (4, B)
    if B_pad != B:
        xt = jnp.pad(xt, ((0, 0), (0, B_pad - B)))     # (4, B_pad)

    const2d = lambda i: (0, 0)                         # weights resident across grid
    flops = 2 * B_pad * (4 * 128 + 128 * 64 + 64 * 32 + 32 * 2)
    param_bytes = 4 * (128 * 4 + 128 + 64 * 128 + 64 + 32 * 64 + 32 + 2 * 32 + 2)
    bytes_accessed = B_pad * (4 + 2) * 4 + param_bytes

    out_t = pl.pallas_call(
        policy_kernel,
        out_shape=jax.ShapeDtypeStruct((2, B_pad), jnp.float32),
        grid=(n_tiles,),
        in_specs=[
            pl.BlockSpec((4, TB), lambda i: (0, i)),       # x^T tile, batch on lanes
            pl.BlockSpec((128, 4), const2d),
            pl.BlockSpec((128, 1), const2d),
            pl.BlockSpec((64, 128), const2d),
            pl.BlockSpec((64, 1), const2d),
            pl.BlockSpec((32, 64), const2d),
            pl.BlockSpec((32, 1), const2d),
            pl.BlockSpec((2, 32), const2d),
            pl.BlockSpec((2, 1), const2d),
        ],
        out_specs=pl.BlockSpec((2, TB), lambda i: (0, i)),
        compiler_params=pltpu.CompilerParams(
            dimension_semantics=("parallel",)),            # 2 TCs on v7x
        cost_estimate=pl.CostEstimate(
            flops=flops,
            transcendentals=2 * B_pad,                     # tanh
            bytes_accessed=bytes_accessed),
    )(xt, w1, b1, w2, b2, w3, b3, wmu, bmu)

    return jnp.transpose(out_t[:, :B])                     # (B, 2)


def init_linear(key, fan_in, fan_out):
    """PyTorch-style nn.Linear init (uniform +/- 1/sqrt(fan_in)).

    Returns (W, b) with W as (out_features, in_features) (PyTorch-native) and
    b as (out_features, 1) for batch-in-lanes broadcasting.
    """
    kw, kb = jax.random.split(key)
    bound = 1.0 / np.sqrt(fan_in)
    w = jax.random.uniform(kw, (fan_out, fan_in), jnp.float32, -bound, bound)
    b = jax.random.uniform(kb, (fan_out, 1), jnp.float32, -bound, bound)
    return w, b


def reference_forward(x, params):
    """Pure-JAX reference for correctness checking (float32 throughout)."""
    (w1, b1), (w2, b2), (w3, b3), (wmu, bmu) = params
    h = jax.nn.leaky_relu(x @ w1.T + b1[:, 0], NEG_SLOPE)
    h = jax.nn.leaky_relu(h @ w2.T + b2[:, 0], NEG_SLOPE)
    h = jax.nn.leaky_relu(h @ w3.T + b3[:, 0], NEG_SLOPE)
    return jnp.tanh(h @ wmu.T + bmu[:, 0])


if __name__ == "__main__":
    key = jax.random.PRNGKey(0)
    k_x, k_x2, k1, k2, k3, k4 = jax.random.split(key, 6)

    params = (
        init_linear(k1, 4, 128),
        init_linear(k2, 128, 64),
        init_linear(k3, 64, 32),
        init_linear(k4, 32, 2),
    )

    # Small-batch check (single tile, padded to 128 lanes).
    B = 8
    x = jax.random.normal(k_x, (B, 4), jnp.float32)
    out = jax.block_until_ready(policy_net_forward(x, params))
    ref = jax.block_until_ready(reference_forward(x, params))
    assert out.shape == (B, 2)
    np.testing.assert_allclose(np.asarray(out), np.asarray(ref),
                               rtol=1e-5, atol=1e-5)

    # Multi-tile check (exercises the batch grid + padding path).
    B2 = 1000
    x2 = jax.random.normal(k_x2, (B2, 4), jnp.float32)
    out2 = jax.block_until_ready(policy_net_forward(x2, params))
    ref2 = jax.block_until_ready(reference_forward(x2, params))
    assert out2.shape == (B2, 2)
    np.testing.assert_allclose(np.asarray(out2), np.asarray(ref2),
                               rtol=1e-5, atol=1e-5)

    print("KERNEL_OK")
</pallas_src>

<mosaic_0001>
module attributes {stable_mosaic.version = 11 : i64} {
  func.func @policy_kernel(%arg0: i32, %arg1: memref<4x128xf32, #tpu.memory_space<vmem>>, %arg2: memref<128x4xf32, #tpu.memory_space<vmem>>, %arg3: memref<128x1xf32, #tpu.memory_space<vmem>>, %arg4: memref<64x128xf32, #tpu.memory_space<vmem>>, %arg5: memref<64x1xf32, #tpu.memory_space<vmem>>, %arg6: memref<32x64xf32, #tpu.memory_space<vmem>>, %arg7: memref<32x1xf32, #tpu.memory_space<vmem>>, %arg8: memref<2x32xf32, #tpu.memory_space<vmem>>, %arg9: memref<2x1xf32, #tpu.memory_space<vmem>>, %arg10: memref<2x128xf32, #tpu.memory_space<vmem>>) attributes {dimension_semantics = [#tpu.dimension_semantics<parallel>], iteration_bounds = array<i64: 1>, scalar_prefetch = 0 : i64, scratch_operands = 0 : i64, tpu.core_type = #tpu.core_type<tc>, window_params = [{transform_indices = @transform_0, window_bounds = array<i64: 4, 128>}, {pipeline_mode = #tpu.pipeline_mode<synchronous>, transform_indices = @transform_1, window_bounds = array<i64: 128, 4>}, {pipeline_mode = #tpu.pipeline_mode<synchronous>, transform_indices = @transform_2, window_bounds = array<i64: 128, 1>}, {pipeline_mode = #tpu.pipeline_mode<synchronous>, transform_indices = @transform_3, window_bounds = array<i64: 64, 128>}, {pipeline_mode = #tpu.pipeline_mode<synchronous>, transform_indices = @transform_4, window_bounds = array<i64: 64, 1>}, {pipeline_mode = #tpu.pipeline_mode<synchronous>, transform_indices = @transform_5, window_bounds = array<i64: 32, 64>}, {pipeline_mode = #tpu.pipeline_mode<synchronous>, transform_indices = @transform_6, window_bounds = array<i64: 32, 1>}, {pipeline_mode = #tpu.pipeline_mode<synchronous>, transform_indices = @transform_7, window_bounds = array<i64: 2, 32>}, {pipeline_mode = #tpu.pipeline_mode<synchronous>, transform_indices = @transform_8, window_bounds = array<i64: 2, 1>}, {transform_indices = @transform_9, window_bounds = array<i64: 2, 128>}]} {
    %c0 = arith.constant 0 : index
    %c0_0 = arith.constant 0 : index
    %0 = vector.load %arg1[%c0, %c0_0] : memref<4x128xf32, #tpu.memory_space<vmem>>, vector<4x128xf32>
    %c0_1 = arith.constant 0 : index
    %c0_2 = arith.constant 0 : index
    %1 = vector.load %arg2[%c0_1, %c0_2] : memref<128x4xf32, #tpu.memory_space<vmem>>, vector<128x4xf32>
    %2 = vector.extract_strided_slice %1 {offsets = [0, 0], sizes = [128, 1], strides = [1, 1]} : vector<128x4xf32> to vector<128x1xf32>
    %3 = vector.extract_strided_slice %0 {offsets = [0, 0], sizes = [1, 128], strides = [1, 1]} : vector<4x128xf32> to vector<1x128xf32>
    %4 = vector.broadcast %2 : vector<128x1xf32> to vector<128x128xf32>
    %5 = vector.broadcast %3 : vector<1x128xf32> to vector<128x128xf32>
    %6 = arith.mulf %4, %5 : vector<128x128xf32>
    %7 = vector.extract_strided_slice %1 {offsets = [0, 1], sizes = [128, 1], strides = [1, 1]} : vector<128x4xf32> to vector<128x1xf32>
    %8 = vector.extract_strided_slice %0 {offsets = [1, 0], sizes = [1, 128], strides = [1, 1]} : vector<4x128xf32> to vector<1x128xf32>
    %9 = vector.broadcast %7 : vector<128x1xf32> to vector<128x128xf32>
    %10 = vector.broadcast %8 : vector<1x128xf32> to vector<128x128xf32>
    %11 = arith.mulf %9, %10 : vector<128x128xf32>
    %12 = arith.addf %6, %11 : vector<128x128xf32>
    %13 = vector.extract_strided_slice %1 {offsets = [0, 2], sizes = [128, 1], strides = [1, 1]} : vector<128x4xf32> to vector<128x1xf32>
    %14 = vector.extract_strided_slice %0 {offsets = [2, 0], sizes = [1, 128], strides = [1, 1]} : vector<4x128xf32> to vector<1x128xf32>
    %15 = vector.broadcast %13 : vector<128x1xf32> to vector<128x128xf32>
    %16 = vector.broadcast %14 : vector<1x128xf32> to vector<128x128xf32>
    %17 = arith.mulf %15, %16 : vector<128x128xf32>
    %18 = arith.addf %12, %17 : vector<128x128xf32>
    %19 = vector.extract_strided_slice %1 {offsets = [0, 3], sizes = [128, 1], strides = [1, 1]} : vector<128x4xf32> to vector<128x1xf32>
    %20 = vector.extract_strided_slice %0 {offsets = [3, 0], sizes = [1, 128], strides = [1, 1]} : vector<4x128xf32> to vector<1x128xf32>
    %21 = vector.broadcast %19 : vector<128x1xf32> to vector<128x128xf32>
    %22 = vector.broadcast %20 : vector<1x128xf32> to vector<128x128xf32>
    %23 = arith.mulf %21, %22 : vector<128x128xf32>
    %24 = arith.addf %18, %23 : vector<128x128xf32>
    %c0_3 = arith.constant 0 : index
    %c0_4 = arith.constant 0 : index
    %25 = vector.load %arg3[%c0_3, %c0_4] : memref<128x1xf32, #tpu.memory_space<vmem>>, vector<128x1xf32>
    %26 = vector.broadcast %25 : vector<128x1xf32> to vector<128x128xf32>
    %27 = arith.addf %24, %26 : vector<128x128xf32>
    %cst = arith.constant 0.00999999977 : f32
    %28 = vector.broadcast %cst : f32 to vector<128x128xf32>
    %29 = arith.mulf %28, %27 : vector<128x128xf32>
    %30 = arith.maximumf %27, %29 : vector<128x128xf32>
    %c0_5 = arith.constant 0 : index
    %c0_6 = arith.constant 0 : index
    %31 = vector.load %arg4[%c0_5, %c0_6] : memref<64x128xf32, #tpu.memory_space<vmem>>, vector<64x128xf32>
    %cst_7 = arith.constant dense<0.000000e+00> : vector<64x128xf32>
    %32 = tpu.matmul %31, %30, %cst_7 {dimension_numbers = #tpu.dot_dimension_numbers<[1], [0], [0], [1], [0, 0, 1, 1], [], []>} : vector<64x128xf32>, vector<128x128xf32>, vector<64x128xf32> -> vector<64x128xf32>
    %c0_8 = arith.constant 0 : index
    %c0_9 = arith.constant 0 : index
    %33 = vector.load %arg5[%c0_8, %c0_9] : memref<64x1xf32, #tpu.memory_space<vmem>>, vector<64x1xf32>
    %34 = vector.broadcast %33 : vector<64x1xf32> to vector<64x128xf32>
    %35 = arith.addf %32, %34 : vector<64x128xf32>
    %cst_10 = arith.constant 0.00999999977 : f32
    %36 = vector.broadcast %cst_10 : f32 to vector<64x128xf32>
    %37 = arith.mulf %36, %35 : vector<64x128xf32>
    %38 = arith.maximumf %35, %37 : vector<64x128xf32>
    %c0_11 = arith.constant 0 : index
    %c0_12 = arith.constant 0 : index
    %39 = vector.load %arg6[%c0_11, %c0_12] : memref<32x64xf32, #tpu.memory_space<vmem>>, vector<32x64xf32>
    %cst_13 = arith.constant dense<0.000000e+00> : vector<32x128xf32>
    %40 = tpu.matmul %39, %38, %cst_13 {dimension_numbers = #tpu.dot_dimension_numbers<[1], [0], [0], [1], [0, 0, 1, 1], [], []>} : vector<32x64xf32>, vector<64x128xf32>, vector<32x128xf32> -> vector<32x128xf32>
    %c0_14 = arith.constant 0 : index
    %c0_15 = arith.constant 0 : index
    %41 = vector.load %arg7[%c0_14, %c0_15] : memref<32x1xf32, #tpu.memory_space<vmem>>, vector<32x1xf32>
    %42 = vector.broadcast %41 : vector<32x1xf32> to vector<32x128xf32>
    %43 = arith.addf %40, %42 : vector<32x128xf32>
    %cst_16 = arith.constant 0.00999999977 : f32
    %44 = vector.broadcast %cst_16 : f32 to vector<32x128xf32>
    %45 = arith.mulf %44, %43 : vector<32x128xf32>
    %46 = arith.maximumf %43, %45 : vector<32x128xf32>
    %c0_17 = arith.constant 0 : index
    %c0_18 = arith.constant 0 : index
    %47 = vector.load %arg8[%c0_17, %c0_18] : memref<2x32xf32, #tpu.memory_space<vmem>>, vector<2x32xf32>
    %cst_19 = arith.constant dense<0.000000e+00> : vector<2x128xf32>
    %48 = tpu.matmul %47, %46, %cst_19 {dimension_numbers = #tpu.dot_dimension_numbers<[1], [0], [0], [1], [0, 0, 1, 1], [], []>} : vector<2x32xf32>, vector<32x128xf32>, vector<2x128xf32> -> vector<2x128xf32>
    %c0_20 = arith.constant 0 : index
    %c0_21 = arith.constant 0 : index
    %49 = vector.load %arg9[%c0_20, %c0_21] : memref<2x1xf32, #tpu.memory_space<vmem>>, vector<2x1xf32>
    %50 = vector.broadcast %49 : vector<2x1xf32> to vector<2x128xf32>
    %51 = arith.addf %48, %50 : vector<2x128xf32>
    %52 = math.tanh %51 : vector<2x128xf32>
    %c0_22 = arith.constant 0 : index
    %c0_23 = arith.constant 0 : index
    %53 = vector.load %arg10[%c0_22, %c0_23] : memref<2x128xf32, #tpu.memory_space<vmem>>, vector<2x128xf32>
    tpu.vector_store %arg10[%c0_22, %c0_23], %52 {strides = array<i32>} : memref<2x128xf32, #tpu.memory_space<vmem>>, vector<2x128xf32>,
    return
  }
  func.func @transform_0(%arg0: i32) -> (i32, i32) {
    %c0_i32 = arith.constant 0 : i32
    %c0_i32_0 = arith.constant 0 : i32
    return %c0_i32, %arg0 : i32, i32
  }
  func.func @transform_1(%arg0: i32) -> (i32, i32) {
    %c0_i32 = arith.constant 0 : i32
    %c0_i32_0 = arith.constant 0 : i32
    %c0_i32_1 = arith.constant 0 : i32
    return %c0_i32, %c0_i32_0 : i32, i32
  }
  func.func @transform_2(%arg0: i32) -> (i32, i32) {
    %c0_i32 = arith.constant 0 : i32
    %c0_i32_0 = arith.constant 0 : i32
    %c0_i32_1 = arith.constant 0 : i32
    return %c0_i32, %c0_i32_0 : i32, i32
  }
  func.func @transform_3(%arg0: i32) -> (i32, i32) {
    %c0_i32 = arith.constant 0 : i32
    %c0_i32_0 = arith.constant 0 : i32
    %c0_i32_1 = arith.constant 0 : i32
    return %c0_i32, %c0_i32_0 : i32, i32
  }
  func.func @transform_4(%arg0: i32) -> (i32, i32) {
    %c0_i32 = arith.constant 0 : i32
    %c0_i32_0 = arith.constant 0 : i32
    %c0_i32_1 = arith.constant 0 : i32
    return %c0_i32, %c0_i32_0 : i32, i32
  }
  func.func @transform_5(%arg0: i32) -> (i32, i32) {
    %c0_i32 = arith.constant 0 : i32
    %c0_i32_0 = arith.constant 0 : i32
    %c0_i32_1 = arith.constant 0 : i32
    return %c0_i32, %c0_i32_0 : i32, i32
  }
  func.func @transform_6(%arg0: i32) -> (i32, i32) {
    %c0_i32 = arith.constant 0 : i32
    %c0_i32_0 = arith.constant 0 : i32
    %c0_i32_1 = arith.constant 0 : i32
    return %c0_i32, %c0_i32_0 : i32, i32
  }
  func.func @transform_7(%arg0: i32) -> (i32, i32) {
    %c0_i32 = arith.constant 0 : i32
    %c0_i32_0 = arith.constant 0 : i32
    %c0_i32_1 = arith.constant 0 : i32
    return %c0_i32, %c0_i32_0 : i32, i32
  }
  func.func @transform_8(%arg0: i32) -> (i32, i32) {
    %c0_i32 = arith.constant 0 : i32
    %c0_i32_0 = arith.constant 0 : i32
    %c0_i32_1 = arith.constant 0 : i32
    return %c0_i32, %c0_i32_0 : i32, i32
  }
  func.func @transform_9(%arg0: i32) -> (i32, i32) {
    %c0_i32 = arith.constant 0 : i32
    %c0_i32_0 = arith.constant 0 : i32
    return %c0_i32, %arg0 : i32, i32
  }
}

</mosaic_0001>

<bundles_post_ra>
// kernel: tpu_custom_call.1
= control target key start
LH: loop header
LB: loop body
LE: loop exit
PB: predicated region body
PF: predicated region fallthrough
CT: control target
= control target key end

     0   :  { %v1255_v2 = vmov 1   ;;  %s1764_s0 = inlined_call_operand.vmem [shape: f32[4,128], index: 0, kind: input, shape index: {}]   ;;  %s1765_s1 = inlined_call_operand.vmem [shape: f32[128,4], index: 1, kind: input, shape index: {}]   ;;  %s1766_s2 = inlined_call_operand.vmem [shape: f32[128,1], index: 2, kind: input, shape index: {}]   ;;  %s1767_s3 = inlined_call_operand.vmem [shape: f32[64,128], index: 3, kind: input, shape index: {}]   ;;  %s1768_s4 = inlined_call_operand.vmem [shape: f32[64,1], index: 4, kind: input, shape index: {}]   ;;  %s1769_s5 = inlined_call_operand.vmem [shape: f32[32,64], index: 5, kind: input, shape index: {}]   ;;  %s1770_s6 = inlined_call_operand.vmem [shape: f32[32,1], index: 6, kind: input, shape index: {}]   ;;  %s1771_s7 = inlined_call_operand.vmem [shape: f32[2,32], index: 7, kind: input, shape index: {}]   ;;  %s1772_s8 = inlined_call_operand.vmem [shape: f32[2,1], index: 8, kind: input, shape index: {}]   ;;  %s1773_s9 = inlined_call_operand.hbm [shape: f32[2,128], index: 9, kind: output, shape index: {}]  }
   0x1   :  { %v38_v0 = vld [vmem:[%s1765_s1 + $0x20] sm:$0xff]  ;;  %1194 = vset.pattern.permute.xlu0 %v1255_v2  ;;  %1187 = vset.pattern.permute.xlu1 %v1255_v2  ;;  %v35_v4 = vld [vmem:[%s1765_s1 + $0x8] sm:$0xff] }
   0x2   :  { %v34_v1 = vld [vmem:[%s1765_s1] sm:$0xff]  ;;  %167 = vperm.xlu0 %1194, %v38_v0  }
   0x3   :  { %151 = vperm.xlu1 %1187, %v34_v1   ;;  %v1324_v3 = vld [vmem:[%s1765_s1 + $0x40] sm:$0xff] }
   0x4   :  { %v1333_v5 = vld [vmem:[%s1765_s1 + $0x60] sm:$0xff] }
   0x6   :  { %183 = vperm.xlu0 %1194, %v1324_v3  }
   0x7   :  { %155 = vperm.xlu1 %1187, %v35_v4  }
   0x8   :  { %14 = vsyncpa [#allocation3], 0  ;;  %v1256_v6 = vmov 2   ;;  %v36_v7 = vld [vmem:[%s1765_s1 + $0x10] sm:$0xff]  ;;  %v1257_v8 = vmov 0   ;;  %v37_v9 = vld [vmem:[%s1765_s1 + $0x18] sm:$0xff]  ;;  %v130_v47 = vlaneseq }
   0x9   :  { %v1258_v10 = vmov 3   ;;  %v39_v11 = vld [vmem:[%s1765_s1 + $0x28] sm:$0xff]  ;;  %v41_v12 = vld [vmem:[%s1765_s1 + $0x38] sm:$0xff]  ;;  %v450_v14 = vld [vmem:[%s1766_s2] sm:$0xff]  ;;  %vm799_vm0 = vcmask 523264   ;;  %vm1260_vm1 = vmmov 0  }
   0xa   :  { %199 = vperm.xlu0 %1194, %v1333_v5   ;;  %v1364_v13 = vld [vmem:[%s1765_s1 + $0x58] sm:$0xff]  ;;  %v451_v15 = vld [vmem:[%s1766_s2 + $0x8] sm:$0xff]  ;;  %v1378_v16 = vld [vmem:[%s1765_s1 + $0x70] sm:$0xff]  ;;  %v131_v50 = vshrl.u32 %v130_v47, 7  ;;  %vm912_vm2 = vcmask 261120   ;;  %s1262_s30 = smov [#allocation2]  }
   0xb   :  { %1188 = vset.pattern.permute.xlu1 %v1256_v6  ;;  %v40_v17 = vld [vmem:[%s1765_s1 + $0x30] sm:$0xff]  ;;  %v453_v18 = vld [vmem:[%s1766_s2 + $0x18] sm:$0xff]  ;;  %v43_v22 = vld [vmem:[%s1765_s1 + $0x48] sm:$0xff]  ;;  %s994_s10 = sshll.u32 %s1262_s30, 4  ;;  %s995_s10 = int_to_ptr.vmem [resolvable:$true] %s994_s10 }
   0xc   :  { %255 = vperm.xlu1 %1188, %v35_v4   ;;  %v452_v19 = vld [vmem:[%s1766_s2 + $0x10] sm:$0xff]  ;;  %v457_v20 = vld [vmem:[%s1766_s2 + $0x38] sm:$0xff]  ;;  %v463_v24 = vld [vmem:[%s1766_s2 + $0x68] sm:$0xff]  ;;  %v216_v53 = vsub.s32 1, %v131_v50  ;;  %v316_v55 = vsub.s32 2, %v131_v50  ;;  %v132_v56 = vsub.s32 0, %v131_v50  ;;  %p1236_p1 = scmp.lt.s32.totalorder %s995_s10, %s995_s10 }
   0xd   :  { %v1406_v21 = vld [vmem:[%s1765_s1 + $0x78] sm:$0xff]  ;;  %v602_v25 = vld [vmem:[%s1768_s4] sm:$0xff]  ;;  %v604_v27 = vld [vmem:[%s1768_s4 + $0x10] sm:$0xff]  ;;  %s1231_s11 = scalar_lea.vmem %s995_s10, 32 }
   0xe   :  { %1215 = vset.pattern.permute.xlu0 %v1256_v6  ;;  %v461_v23 = vld [vmem:[%s1766_s2 + $0x58] sm:$0xff]  ;;  %v454_v26 = vld [vmem:[%s1766_s2 + $0x20] sm:$0xff]  ;;  %v455_v28 = vld [vmem:[%s1766_s2 + $0x28] sm:$0xff]  ;;  %p1232_p0 = scmp.ne.s32.totalorder %s995_s10, %s1231_s11  ;;  %p1237_p2 = scmp.lt.s32.totalorder %s1231_s11, %s1231_s11 }
   0xf   :  { %251 = vperm.xlu0 %1215, %v34_v1   ;;  %v606_v29 = vld [vmem:[%s1768_s4 + $0x20] sm:$0xff]  ;;  %v608_v30 = vld [vmem:[%s1768_s4 + $0x30] sm:$0xff]  ;;  %v1504_v60 = vld [vmem:[%s1765_s1 + $0x68] sm:$0xff] }
  0x10   :  { %1189 = vset.pattern.permute.xlu1 %v1257_v8  ;;  %v775_v33 = vld [vmem:[%s1770_s6] sm:$0xff]  ;;  %v1449_v34 = vld [vmem:[%s1765_s1 + $0x50] sm:$0xff]  ;;  %p1238_p3 = por %p1237_p2, %p1236_p1 }
  0x11   :  { %62 = vperm.xlu1 %1189, %v36_v7   ;;  %v777_v37 = vld [vmem:[%s1770_s6 + $0x10] sm:$0xff]  ;;  %v906_v40 = vld [vmem:[%s1772_s8] sm:$0x3] }
  0x12   :  { %v456_v46 = vld [vmem:[%s1766_s2 + $0x30] sm:$0xff]  ;;  %v33_v54 = vld [vmem:[%s1764_s0] sm:$0xf]  ;;  %p1239_p4 = pnand %p1238_p3, %p1232_p0 }
  0x13   :  { %263 = vperm.xlu0 %1215, %v37_v9   ;;  %v1499_v59 = vrot.slane %v33_v54, %v216_v53  ;;  %v1507_v62 = vrot.slane %v33_v54, %v316_v55  ;;  %v1509_v63 = vrot.slane %v33_v54, %v132_v56 }
  0x15   :  { %1190 = vset.pattern.permute.xlu1 %v1255_v2 }
  0x16   :  { %159 = vperm.xlu1 %1190, %v36_v7  }
  0x17   :  { %267 = vperm.xlu0 %1215, %v38_v0  }
  0x1a   :  { %163 = vperm.xlu1 %1190, %v37_v9  }
  0x1b   :  { %283 = vperm.xlu0 %1215, %v1324_v3  }
  0x1e   :  { %1191 = vset.pattern.permute.xlu1 %v1258_v10 }
  0x1f   :  { %355 = vperm.xlu1 %1191, %v35_v4   ;;  %299 = vperm.xlu0 %1215, %v1333_v5  }
  0x23   :  { %1192 = vset.pattern.permute.xlu1 %v1256_v6  ;;  %1219 = vset.pattern.permute.xlu0 %v1258_v10 }
  0x24   :  { %259 = vperm.xlu1 %1192, %v36_v7   ;;  %351 = vperm.xlu0 %1219, %v34_v1  }
  0x28   :  { %1193 = vset.pattern.permute.xlu1 %v1257_v8  ;;  %363 = vperm.xlu0 %1219, %v37_v9  }
  0x29   :  { %72 = vperm.xlu1 %1193, %v38_v0  }
  0x2c   :  { %367 = vperm.xlu0 %1219, %v38_v0   ;;  %v416_v0 = vsub.s32 3, %v131_v50 }
  0x2d   :  { %77 = vperm.xlu1 %1193, %v39_v11  }
  0x30   :  { %379 = vperm.xlu0 %1219, %v41_v12  }
  0x31   :  { %1195 = vset.pattern.permute.xlu1 %v1255_v2 }
  0x32   :  { %171 = vperm.xlu1 %1195, %v39_v11  }
  0x34   :  { %383 = vperm.xlu0 %1219, %v1324_v3  }
  0x36   :  { %1196 = vset.pattern.permute.xlu1 %v1258_v10 }
  0x37   :  { %359 = vperm.xlu1 %1196, %v36_v7   ;;  %v1517_v7 = vrot.slane %v33_v54, %v416_v0 }
  0x38   :  { %395 = vperm.xlu0 %1219, %v1364_v13  }
  0x3b   :  { %1197 = vset.pattern.permute.xlu1 %v1257_v8 }
  0x3c   :  { %468 = vperm.xlu1 %1197, %v450_v14   ;;  %399 = vperm.xlu0 %1219, %v1333_v5  }
  0x40   :  { %473 = vperm.xlu1 %1197, %v451_v15   ;;  %407 = vperm.xlu0 %1219, %v1378_v16  }
  0x44   :  { %1198 = vset.pattern.permute.xlu1 %v1256_v6  ;;  %1226 = vset.pattern.permute.xlu0 %v1257_v8 }
  0x45   :  { %271 = vperm.xlu1 %1198, %v39_v11   ;;  %52 = vperm.xlu0 %1226, %v34_v1  }
  0x49   :  { %1199 = vset.pattern.permute.xlu1 %v1257_v8  ;;  %57 = vperm.xlu0 %1226, %v35_v4  }
  0x4a   :  { %82 = vperm.xlu1 %1199, %v40_v17  }
  0x4d   :  { %67 = vperm.xlu0 %1226, %v37_v9  }
  0x4e   :  { %1200 = vset.pattern.permute.xlu1 %v1255_v2 }
  0x4f   :  { %175 = vperm.xlu1 %1200, %v40_v17  }
  0x51   :  { %87 = vperm.xlu0 %1226, %v41_v12  }
  0x53   :  { %179 = vperm.xlu1 %1200, %v41_v12  }
  0x55   :  { %483 = vperm.xlu0 %1226, %v453_v18  }
  0x57   :  { %1201 = vset.pattern.permute.xlu1 %v1258_v10 }
  0x58   :  { %371 = vperm.xlu1 %1201, %v39_v11  }
  0x59   :  { %92 = vperm.xlu0 %1226, %v1324_v3  }
  0x5c   :  { %1202 = vset.pattern.permute.xlu1 %v1257_v8 }
  0x5d   :  { %478 = vperm.xlu1 %1202, %v452_v19   ;;  %107 = vperm.xlu0 %1226, %v1364_v13  }
  0x61   :  { %1203 = vset.pattern.permute.xlu1 %v1256_v6  ;;  %503 = vperm.xlu0 %1226, %v457_v20   ;;  %v458_v20 = vld [vmem:[%s1766_s2 + $0x40] sm:$0xff] }
  0x62   :  { %275 = vperm.xlu1 %1203, %v40_v17  }
  0x65   :  { %112 = vperm.xlu0 %1226, %v1333_v5  }
  0x66   :  { %279 = vperm.xlu1 %1203, %v41_v12  }
  0x69   :  { %127 = vperm.xlu0 %1226, %v1406_v21  }
  0x6a   :  { %1204 = vset.pattern.permute.xlu1 %v1257_v8 }
  0x6b   :  { %97 = vperm.xlu1 %1204, %v43_v22  }
  0x6d   :  { %523 = vperm.xlu0 %1226, %v461_v23  }
  0x6f   :  { %1205 = vset.pattern.permute.xlu1 %v1255_v2 }
  0x70   :  { %187 = vperm.xlu1 %1205, %v43_v22  }
  0x71   :  { %533 = vperm.xlu0 %1226, %v463_v24   ;;  %v459_v24 = vld [vmem:[%s1766_s2 + $0x48] sm:$0xff] }
  0x74   :  { %1206 = vset.pattern.permute.xlu1 %v1258_v10 }
  0x75   :  { %375 = vperm.xlu1 %1206, %v40_v17   ;;  %612 = vperm.xlu0 %1226, %v602_v25  }
  0x79   :  { %1207 = vset.pattern.permute.xlu1 %v1257_v8  ;;  %622 = vperm.xlu0 %1226, %v604_v27  }
  0x7a   :  { %488 = vperm.xlu1 %1207, %v454_v26  }
  0x7d   :  { %632 = vperm.xlu0 %1226, %v606_v29  }
  0x7e   :  { %493 = vperm.xlu1 %1207, %v455_v28  }
  0x81   :  { %v168_v32 = vpop.permute.xlu0 %167  ;;  %642 = vperm.xlu0 %1226, %v608_v30  }
  0x82   :  { %1208 = vset.pattern.permute.xlu1 %v1256_v6  ;;  %v1441_v31 = vpop.permute.xlu1 %151  ;;  %v222_v61 = vmul.f32 %v1499_v59, %v168_v32 }
  0x83   :  { %287 = vperm.xlu1 %1208, %v43_v22   ;;  %v218_v32 = vmul.f32 %v1499_v59, %v1441_v31 }
  0x85   :  { %v1453_v36 = vpop.permute.xlu0 %183  ;;  %781 = vperm.xlu0 %1226, %v775_v33  }
  0x86   :  { %v1451_v35 = vpop.permute.xlu1 %155 }
  0x87   :  { %1209 = vset.pattern.permute.xlu1 %v1257_v8  ;;  %v219_v47 = vmul.f32 %v1499_v59, %v1451_v35 }
  0x88   :  { %102 = vperm.xlu1 %1209, %v1449_v34  }
  0x89   :  { %v1460_v38 = vpop.permute.xlu0 %199  ;;  %791 = vperm.xlu0 %1226, %v777_v37  }
  0x8b   :  { %v1462_v39 = vpop.permute.xlu1 %255 }
  0x8c   :  { %1210 = vset.pattern.permute.xlu1 %v1255_v2  ;;  %v319_v31 = vmul.f32 %v1507_v62, %v1462_v39 }
  0x8d   :  { %191 = vperm.xlu1 %1210, %v1449_v34   ;;  %909 = vperm.xlu0 %1226, %v906_v40  }
  0x8e   :  { %v1469_v41 = vpop.permute.xlu0 %251 }
  0x8f   :  { %v318_v33 = vmul.f32 %v1507_v62, %v1469_v41 }
  0x90   :  { %v1471_v42 = vpop.permute.xlu1 %62 }
  0x91   :  { %195 = vperm.xlu1 %1210, %v1364_v13  }
  0x92   :  { %v1474_v43 = vpop.permute.xlu0 %263 }
  0x93   :  { %v321_v55 = vmul.f32 %v1507_v62, %v1474_v43 }
  0x95   :  { %1211 = vset.pattern.permute.xlu1 %v1258_v10  ;;  %v1477_v44 = vpop.permute.xlu1 %159 }
  0x96   :  { %387 = vperm.xlu1 %1211, %v43_v22   ;;  %v268_v45 = vpop.permute.xlu0 %267 }
  0x97   :  { %v322_v4 = vmul.f32 %v1507_v62, %v268_v45 }
  0x99   :  { %v1482_v48 = vpop.permute.xlu1 %163 }
  0x9a   :  { %1212 = vset.pattern.permute.xlu1 %v1257_v8  ;;  %v1485_v49 = vpop.permute.xlu0 %283  ;;  %v221_v56 = vmul.f32 %v1499_v59, %v1482_v48 }
  0x9b   :  { %498 = vperm.xlu1 %1212, %v456_v46  }
  0x9e   :  { %v1487_v51 = vpop.permute.xlu1 %355  ;;  %v1490_v52 = vpop.permute.xlu0 %299 }
  0x9f   :  { %1213 = vset.pattern.permute.xlu1 %v1256_v6  ;;  %v419_v35 = vmul.f32 %v1517_v7, %v1487_v51 }
  0xa0   :  { %291 = vperm.xlu1 %1213, %v1449_v34  }
  0xa3   :  { %v1496_v57 = vpop.permute.xlu1 %259  ;;  %v352_v58 = vpop.permute.xlu0 %351 }
  0xa4   :  { %295 = vperm.xlu1 %1213, %v1364_v13   ;;  %v418_v37 = vmul.f32 %v1517_v7, %v352_v58 }
  0xa7   :  { %v1511_v1 = vpop.permute.xlu0 %363 }
  0xa8   :  { %1214 = vset.pattern.permute.xlu1 %v1257_v8  ;;  %v73_v3 = vpop.permute.xlu1 %72  ;;  %v421_v48 = vmul.f32 %v1517_v7, %v1511_v1  ;;  %v136_v1 = vmul.f32 %v1509_v63, %v1471_v42 }
  0xa9   :  { %v138_v5 = vmul.f32 %v1509_v63, %v73_v3  ;;  %117 = vperm.xlu1 %1214, %v1504_v60  }
  0xab   :  { %v238_v9 = vadd.f32 %v222_v61, %v138_v5  ;;  %v368_v11 = vpop.permute.xlu0 %367 }
  0xac   :  { %v1519_v12 = vpop.permute.xlu1 %77  ;;  %v422_v13 = vmul.f32 %v1517_v7, %v368_v11 }
  0xad   :  { %1216 = vset.pattern.permute.xlu1 %v1255_v2  ;;  %v338_v14 = vadd.f32 %v322_v4, %v238_v9 }
  0xae   :  { %203 = vperm.xlu1 %1216, %v1504_v60  }
  0xaf   :  { %v1524_v15 = vadd.f32 %v422_v13, %v338_v14  ;;  %v1526_v17 = vpop.permute.xlu0 %379 }
  0xb1   :  { %v1528_v18 = vpop.permute.xlu1 %171 }
  0xb2   :  { %1217 = vset.pattern.permute.xlu1 %v1258_v10 }
  0xb3   :  { %391 = vperm.xlu1 %1217, %v1449_v34   ;;  %v1532_v19 = vpop.permute.xlu0 %383 }
  0xb6   :  { %v1537_v22 = vpop.permute.xlu1 %359 }
  0xb7   :  { %1218 = vset.pattern.permute.xlu1 %v1257_v8  ;;  %v1540_v23 = vpop.permute.xlu0 %395 }
  0xb8   :  { %508 = vperm.xlu1 %1218, %v458_v20  }
  0xbb   :  { %v469_v25 = vpop.permute.xlu1 %468  ;;  %v1545_v26 = vpop.permute.xlu0 %399 }
  0xbc   :  { %513 = vperm.xlu1 %1218, %v459_v24   ;;  %v220_v24 = vmul.f32 %v1499_v59, %v1477_v44 }
  0xbe   :  { %v236_v44 = vadd.f32 %v220_v24, %v136_v1  ;;  %v465_v24 = vld [vmem:[%s1766_s2 + $0x78] sm:$0xff] }
  0xbf   :  { %v474_v27 = vpop.permute.xlu1 %473  ;;  %v1548_v28 = vpop.permute.xlu0 %407 }
  0xc0   :  { %1220 = vset.pattern.permute.xlu1 %v1256_v6 }
  0xc1   :  { %303 = vperm.xlu1 %1220, %v1504_v60  }
  0xc4   :  { %v1551_v29 = vpop.permute.xlu1 %271  ;;  %v53_v30 = vpop.permute.xlu0 %52 }
  0xc5   :  { %1221 = vset.pattern.permute.xlu1 %v1257_v8  ;;  %v134_v34 = vmul.f32 %v1509_v63, %v53_v30  ;;  %v320_v30 = vmul.f32 %v1507_v62, %v1496_v57 }
  0xc6   :  { %122 = vperm.xlu1 %1221, %v1378_v16  }
  0xc7   :  { %v234_v40 = vadd.f32 %v218_v32, %v134_v34  ;;  %v336_v57 = vadd.f32 %v320_v30, %v236_v44  ;;  %v603_v30 = vld [vmem:[%s1768_s4 + $0x8] sm:$0xff] }
  0xc8   :  { %v58_v45 = vpop.permute.xlu0 %57 }
  0xc9   :  { %v83_v46 = vpop.permute.xlu1 %82  ;;  %v334_v50 = vadd.f32 %v318_v33, %v234_v40  ;;  %v135_v53 = vmul.f32 %v1509_v63, %v58_v45  ;;  %v420_v40 = vmul.f32 %v1517_v7, %v1537_v22  ;;  %v226_v45 = vmul.f32 %v1499_v59, %v1453_v36 }
  0xca   :  { %1222 = vset.pattern.permute.xlu1 %v1255_v2  ;;  %v140_v4 = vmul.f32 %v1509_v63, %v83_v46  ;;  %v426_v22 = vmul.f32 %v1517_v7, %v1532_v19 }
  0xcb   :  { %207 = vperm.xlu1 %1222, %v1378_v16   ;;  %v434_v41 = vadd.f32 %v418_v37, %v334_v50  ;;  %v235_v54 = vadd.f32 %v219_v47, %v135_v53  ;;  %v326_v50 = vmul.f32 %v1507_v62, %v1485_v49 }
  0xcc   :  { %v68_v58 = vpop.permute.xlu0 %67 }
  0xcd   :  { %v335_v61 = vadd.f32 %v319_v31, %v235_v54  ;;  %v137_v2 = vmul.f32 %v1509_v63, %v68_v58  ;;  %v546_v3 = vadd.f32 %v469_v25, %v434_v41  ;;  %v436_v31 = vadd.f32 %v420_v40, %v336_v57 }
  0xce   :  { %v176_v0 = vpop.permute.xlu1 %175 }
  0xcf   :  { %v224_v39 = vmul.f32 %v1499_v59, %v176_v0  ;;  %211 = vperm.xlu1 %1222, %v1406_v21   ;;  %v435_v5 = vadd.f32 %v419_v35, %v335_v61  ;;  %v237_v43 = vadd.f32 %v221_v56, %v137_v2  ;;  %v562_v20 = vmul.f32 0.01, %v546_v3 }
  0xd0   :  { %v1582_v11 = vpop.permute.xlu0 %87 }
  0xd1   :  { %v1580_v9 = vadd.f32 %v224_v39, %v140_v4  ;;  %v337_v13 = vadd.f32 %v321_v55, %v237_v43  ;;  %v547_v14 = vadd.f32 %v474_v27, %v435_v5  ;;  %v460_v27 = vld [vmem:[%s1766_s2 + $0x50] sm:$0xff]  ;;  %v578_v34 = vmax.f32 %v546_v3, %v562_v20 }
  0xd2   :  { %v1584_v51 = vpop.permute.xlu1 %179  ;;  %v430_v43 = vmul.f32 %v1517_v7, %v1545_v26 }
  0xd3   :  { %1223 = vset.pattern.permute.xlu1 %v1258_v10  ;;  %v563_v25 = vmul.f32 0.01, %v547_v14  ;;  %v437_v33 = vadd.f32 %v421_v48, %v337_v13 }
  0xd4   :  { %403 = vperm.xlu1 %1223, %v1504_v60   ;;  %v484_v32 = vpop.permute.xlu0 %483 }
  0xd5   :  { %v579_v37 = vmax.f32 %v547_v14, %v563_v25  ;;  %v549_v46 = vadd.f32 %v484_v32, %v437_v33  ;;  %v139_v32 = vmul.f32 %v1509_v63, %v1519_v12  ;;  %v323_v33 = vmul.f32 %v1507_v62, %v1551_v29  ;;  %v607_v12 = vld [vmem:[%s1768_s4 + $0x28] sm:$0xff]  ;;  %v594_v29 = vld [vmem:[%s1767_s3] sm:$0xff] }
  0xd6   :  { %1080 = vmatprep.mubr.f32.mxu0 %v594_v29 }
  0xd7   :  { %v372_v60 = vpop.permute.xlu1 %371  ;;  %v1125_v42 = vpack.c.bf16 %v579_v37, %v578_v34  ;;  %v565_v54 = vmul.f32 0.01, %v549_v46 }
  0xd8   :  { %1224 = vset.pattern.permute.xlu1 %v1257_v8  ;;  %v93_v47 = vpop.permute.xlu0 %92  ;;  %v423_v34 = vmul.f32 %v1517_v7, %v372_v60 }
  0xd9   :  { %518 = vperm.xlu1 %1224, %v460_v27   ;;  %1126 = vmatprep.subr.bf16.mxu0 %v1125_v42  ;;  %v142_v53 = vmul.f32 %v1509_v63, %v93_v47  ;;  %v581_v61 = vmax.f32 %v549_v46, %v565_v54  ;;  %v225_v54 = vmul.f32 %v1499_v59, %v1584_v51 }
  0xda   :  { %1128 = vmatpush3.bf16.msra.mxu0 %v1125_v42 }
  0xdb   :  { %v242_v36 = vadd.f32 %v226_v45, %v142_v53 }
  0xdc   :  { %v479_v41 = vpop.permute.xlu1 %478  ;;  %v1608_v56 = vpop.permute.xlu0 %107 }
  0xdd   :  { %v548_v55 = vadd.f32 %v479_v41, %v436_v31  ;;  %1225 = vset.pattern.permute.xlu1 %v1256_v6  ;;  %v342_v58 = vadd.f32 %v326_v50, %v242_v36  ;;  %v230_v6 = vmul.f32 %v1499_v59, %v1460_v38  ;;  %v462_v38 = vld [vmem:[%s1766_s2 + $0x60] sm:$0xff]  ;;  %v141_v36 = vmul.f32 %v1509_v63, %v1582_v11 }
  0xde   :  { %307 = vperm.xlu1 %1225, %v1378_v16   ;;  %v330_v16 = vmul.f32 %v1507_v62, %v1490_v52 }
  0xdf   :  { %v564_v49 = vmul.f32 0.01, %v548_v55  ;;  %v1611_v35 = vadd.f32 %v426_v22, %v342_v58  ;;  %v776_v22 = vld [vmem:[%s1770_s6 + $0x8] sm:$0xff] }
  0xe0   :  { %v1615_v3 = vpop.permute.xlu0 %503 }
  0xe1   :  { %v580_v2 = vmax.f32 %v548_v55, %v564_v49  ;;  %v1613_v0 = vpop.permute.xlu1 %275  ;;  %v778_v55 = vld [vmem:[%s1770_s6 + $0x18] sm:$0xff] }
  0xe2   :  { %311 = vperm.xlu1 %1225, %v1406_v21   ;;  %v324_v51 = vmul.f32 %v1507_v62, %v1613_v0 }
  0xe3   :  { %v1129_v19 = vpack.c.bf16 %v581_v61, %v580_v2  ;;  %v241_v61 = vadd.f32 %v225_v54, %v141_v36 }
  0xe4   :  { %v113_v39 = vpop.permute.xlu0 %112 }
  0xe5   :  { %v280_v4 = vpop.permute.xlu1 %279  ;;  %1130 = vmatprep.subr.bf16.mxu0 %v1129_v19  ;;  %v146_v5 = vmul.f32 %v1509_v63, %v113_v39 }
  0xe6   :  { %1227 = vset.pattern.permute.xlu1 %v1258_v10  ;;  %1132 = vmatpush3.bf16.msra.mxu0 %v1129_v19  ;;  %v464_v10 = vld [vmem:[%s1766_s2 + $0x70] sm:$0xff]  ;;  %v325_v58 = vmul.f32 %v1507_v62, %v280_v4 }
  0xe7   :  { %411 = vperm.xlu1 %1227, %v1406_v21   ;;  %v246_v48 = vadd.f32 %v230_v6, %v146_v5  ;;  %v425_v6 = vmul.f32 %v1517_v7, %v1526_v17 }
  0xe8   :  { %v341_v11 = vadd.f32 %v325_v58, %v241_v61 }
  0xe9   :  { %v346_v14 = vadd.f32 %v330_v16, %v246_v48  ;;  %v340_v48 = vadd.f32 %v324_v51, %v1580_v9 }
  0xea   :  { %v98_v13 = vpop.permute.xlu1 %97  ;;  %v441_v5 = vadd.f32 %v425_v6, %v341_v11 }
  0xeb   :  { %1228 = vset.pattern.permute.xlu1 %v1257_v8  ;;  %v1631_v52 = vadd.f32 %v430_v43, %v346_v14  ;;  %v143_v20 = vmul.f32 %v1509_v63, %v98_v13  ;;  %v223_v8 = vmul.f32 %v1499_v59, %v1528_v18  ;;  %v605_v18 = vld [vmem:[%s1768_s4 + $0x18] sm:$0xff] }
  0xec   :  { %528 = vperm.xlu1 %1228, %v462_v38   ;;  %v553_v38 = vadd.f32 %v1615_v3, %v441_v5 }
  0xed   :  { %v239_v27 = vadd.f32 %v223_v8, %v139_v32 }
  0xef   :  { %v188_v21 = vpop.permute.xlu1 %187  ;;  %v339_v44 = vadd.f32 %v323_v33, %v239_v27 }
  0xf0   :  { %v227_v26 = vmul.f32 %v1499_v59, %v188_v21  ;;  %538 = vperm.xlu1 %1228, %v464_v10   ;;  %v569_v10 = vmul.f32 0.01, %v553_v38 }
  0xf1   :  { %v439_v45 = vadd.f32 %v423_v34, %v339_v44 }
  0xf2   :  { %v1641_v25 = vadd.f32 %v227_v26, %v143_v20  ;;  %v585_v17 = vmax.f32 %v553_v38, %v569_v10 }
  0xf4   :  { %543 = vperm.xlu1 %1228, %v465_v24   ;;  %v376_v1 = vpop.permute.xlu1 %375 }
  0xf5   :  { %v424_v43 = vmul.f32 %v1517_v7, %v376_v1 }
  0xf7   :  { %v440_v13 = vadd.f32 %v424_v43, %v340_v48 }
  0xf8   :  { %617 = vperm.xlu1 %1228, %v603_v30  }
  0xf9   :  { %v489_v37 = vpop.permute.xlu1 %488 }
  0xfa   :  { %v550_v40 = vadd.f32 %v489_v37, %v1524_v15  ;;  %v609_v15 = vld [vmem:[%s1768_s4 + $0x38] sm:$0xff] }
  0xfc   :  { %627 = vperm.xlu1 %1228, %v605_v18   ;;  %v566_v60 = vmul.f32 0.01, %v550_v40 }
  0xfd   :  { %v494_v42 = vpop.permute.xlu1 %493 }
  0xfe   :  { %v551_v57 = vadd.f32 %v494_v42, %v439_v45  ;;  %v582_v47 = vmax.f32 %v550_v40, %v566_v60 }
 0x100   :  { %v567_v46 = vmul.f32 0.01, %v551_v57  ;;  %637 = vperm.xlu1 %1228, %v607_v12  }
 0x102   :  { %v583_v50 = vmax.f32 %v551_v57, %v567_v46  ;;  %v288_v53 = vpop.permute.xlu1 %287  ;;  %v145_v46 = vmul.f32 %v1509_v63, %v1608_v56 }
 0x103   :  { %v327_v33 = vmul.f32 %v1507_v62, %v288_v53  ;;  %v128_v53 = vpop.permute.xlu0 %127 }
 0x104   :  { %647 = vperm.xlu1 %1228, %v609_v15   ;;  %v1133_v31 = vpack.c.bf16 %v583_v50, %v582_v47 }
 0x105   :  { %v343_v27 = vadd.f32 %v327_v33, %v1641_v25 }
 0x106   :  { %1134 = vmatprep.subr.bf16.mxu0 %v1133_v31 }
 0x107   :  { %v103_v41 = vpop.permute.xlu1 %102  ;;  %1136 = vmatpush3.bf16.msra.mxu0 %v1133_v31  ;;  %v524_v58 = vpop.permute.xlu0 %523 }
 0x108   :  { %786 = vperm.xlu1 %1228, %v776_v22   ;;  %v144_v2 = vmul.f32 %v1509_v63, %v103_v41  ;;  %v429_v22 = vmul.f32 %v1517_v7, %v1540_v23 }
 0x10c   :  { %796 = vperm.xlu1 %1228, %v778_v55   ;;  %v192_v49 = vpop.permute.xlu1 %191 }
 0x10d   :  { %v228_v19 = vmul.f32 %v1499_v59, %v192_v49 }
 0x10f   :  { %v244_v39 = vadd.f32 %v228_v19, %v144_v2 }
 0x110   :  { %v196_v16 = vpop.permute.xlu1 %195 }
 0x111   :  { %v229_v15 = vmul.f32 %v1499_v59, %v196_v16 }
 0x113   :  { %v245_v47 = vadd.f32 %v229_v15, %v145_v46 }
 0x115   :  { %v388_v4 = vpop.permute.xlu1 %387 }
 0x116   :  { %v427_v9 = vmul.f32 %v1517_v7, %v388_v4 }
 0x118   :  { %v443_v37 = vadd.f32 %v427_v9, %v343_v27  ;;  %v149_v9 = vmul.f32 %v1509_v63, %v128_v53  ;;  %v599_v53 = vld [vmem:[%s1767_s3 + $0x28] sm:$0xff] }
 0x11a   :  { %v499_v14 = vpop.permute.xlu1 %498 }
 0x11b   :  { %v552_v21 = vadd.f32 %v499_v14, %v440_v13 }
 0x11d   :  { %v568_v20 = vmul.f32 0.01, %v552_v21 }
 0x11f   :  { %v584_v26 = vmax.f32 %v552_v21, %v568_v20  ;;  %v292_v24 = vpop.permute.xlu1 %291 }
 0x120   :  { %v328_v41 = vmul.f32 %v1507_v62, %v292_v24  ;;  %v534_v24 = vpop.permute.xlu0 %533 }
 0x121   :  { %v1137_v8 = vpack.c.bf16 %v585_v17, %v584_v26 }
 0x122   :  { %v344_v56 = vadd.f32 %v328_v41, %v244_v39  ;;  %v771_v41 = vld [vmem:[%s1769_s5] sm:$0xff] }
 0x123   :  { %v296_v30 = vpop.permute.xlu1 %295  ;;  %1138 = vmatprep.subr.bf16.mxu0 %v1137_v8  ;;  %1108 = vmatprep.mubr.msk.f32.mxu1 %vm799_vm0, %v771_v41 }
 0x124   :  { %1140 = vmatpush3.bf16.msra.mxu0 %v1137_v8  ;;  %v329_v25 = vmul.f32 %v1507_v62, %v296_v30 }
 0x126   :  { %v345_v50 = vadd.f32 %v329_v25, %v245_v47  ;;  %v597_v47 = vld [vmem:[%s1767_s3 + $0x18] sm:$0xff] }
 0x128   :  { %v118_v0 = vpop.permute.xlu1 %117  ;;  %v445_v36 = vadd.f32 %v429_v22, %v345_v50  ;;  %v598_v50 = vld [vmem:[%s1767_s3 + $0x20] sm:$0xff]  ;;  %v601_v22 = vld [vmem:[%s1767_s3 + $0x38] sm:$0xff] }
 0x129   :  { %v147_v23 = vmul.f32 %v1509_v63, %v118_v0 }
 0x12a   :  { %v557_v49 = vadd.f32 %v524_v58, %v445_v36 }
 0x12c   :  { %v573_v6 = vmul.f32 0.01, %v557_v49 }
 0x12d   :  { %v204_v32 = vpop.permute.xlu1 %203 }
 0x12e   :  { %v231_v16 = vmul.f32 %v1499_v59, %v204_v32  ;;  %v589_v43 = vmax.f32 %v557_v49, %v573_v6 }
 0x130   :  { %v247_v38 = vadd.f32 %v231_v16, %v147_v23 }
 0x132   :  { %v392_v1 = vpop.permute.xlu1 %391 }
 0x133   :  { %v428_v54 = vmul.f32 %v1517_v7, %v392_v1  ;;  %v432_v1 = vmul.f32 %v1517_v7, %v1548_v28 }
 0x135   :  { %v444_v61 = vadd.f32 %v428_v54, %v344_v56  ;;  %v613_v54 = vpop.permute.xlu0 %612 }
 0x137   :  { %v509_v3 = vpop.permute.xlu1 %508 }
 0x138   :  { %v554_v34 = vadd.f32 %v509_v3, %v1611_v35 }
 0x139   :  { %v623_v56 = vpop.permute.xlu0 %622 }
 0x13a   :  { %v570_v44 = vmul.f32 0.01, %v554_v34 }
 0x13b   :  { %v514_v18 = vpop.permute.xlu1 %513 }
 0x13c   :  { %v555_v40 = vadd.f32 %v514_v18, %v443_v37  ;;  %v586_v42 = vmax.f32 %v554_v34, %v570_v44 }
 0x13e   :  { %v571_v45 = vmul.f32 0.01, %v555_v40 }
 0x140   :  { %v587_v12 = vmax.f32 %v555_v40, %v571_v45  ;;  %v304_v29 = vpop.permute.xlu1 %303 }
 0x141   :  { %v331_v4 = vmul.f32 %v1507_v62, %v304_v29 }
 0x142   :  { %v1141_v60 = vpack.c.bf16 %v587_v12, %v586_v42 }
 0x143   :  { %v347_v14 = vadd.f32 %v331_v4, %v247_v38 }
 0x144   :  { %1142 = vmatprep.subr.bf16.mxu0 %v1141_v60 }
 0x145   :  { %v123_v57 = vpop.permute.xlu1 %122  ;;  %1144 = vmatpush3.bf16.msra.mxu0 %v1141_v60 }
 0x146   :  { %v148_v20 = vmul.f32 %v1509_v63, %v123_v57 }
 0x14a   :  { %v208_v35 = vpop.permute.xlu1 %207 }
 0x14b   :  { %v232_v10 = vmul.f32 %v1499_v59, %v208_v35  ;;  %v596_v35 = vld [vmem:[%s1767_s3 + $0x10] sm:$0xff] }
 0x14d   :  { %v248_v8 = vadd.f32 %v232_v10, %v148_v20 }
 0x14e   :  { %v212_v31 = vpop.permute.xlu1 %211 }
 0x14f   :  { %v233_v0 = vmul.f32 %v1499_v59, %v212_v31  ;;  %v600_v31 = vld [vmem:[%s1767_s3 + $0x30] sm:$0xff] }
 0x151   :  { %v249_v37 = vadd.f32 %v233_v0, %v149_v9 }
 0x153   :  { %v404_v55 = vpop.permute.xlu1 %403 }
 0x154   :  { %v431_v13 = vmul.f32 %v1517_v7, %v404_v55 }
 0x156   :  { %v447_v21 = vadd.f32 %v431_v13, %v347_v14 }
 0x158   :  { %v519_v2 = vpop.permute.xlu1 %518  ;;  %v559_v30 = vadd.f32 %v534_v24, %v447_v21 }
 0x159   :  { %v556_v19 = vadd.f32 %v519_v2, %v444_v61 }
 0x15a   :  { %v575_v3 = vmul.f32 0.01, %v559_v30 }
 0x15b   :  { %v572_v11 = vmul.f32 0.01, %v556_v19 }
 0x15c   :  { %v591_v29 = vmax.f32 %v559_v30, %v575_v3 }
 0x15d   :  { %v588_v51 = vmax.f32 %v556_v19, %v572_v11  ;;  %v308_v5 = vpop.permute.xlu1 %307 }
 0x15e   :  { %v332_v17 = vmul.f32 %v1507_v62, %v308_v5 }
 0x15f   :  { %v1145_v48 = vpack.c.bf16 %v589_v43, %v588_v51 }
 0x160   :  { %v348_v32 = vadd.f32 %v332_v17, %v248_v8 }
 0x161   :  { %v312_v39 = vpop.permute.xlu1 %311  ;;  %1146 = vmatprep.subr.bf16.mxu0 %v1145_v48 }
 0x162   :  { %1148 = vmatpush3.bf16.msra.mxu0 %v1145_v48  ;;  %v333_v27 = vmul.f32 %v1507_v62, %v312_v39  ;;  %v448_v40 = vadd.f32 %v432_v1, %v348_v32  ;;  %v633_v48 = vpop.permute.xlu0 %632 }
 0x164   :  { %v349_v42 = vadd.f32 %v333_v27, %v249_v37 }
 0x166   :  { %v412_v26 = vpop.permute.xlu1 %411  ;;  %v643_v1 = vpop.permute.xlu0 %642 }
 0x167   :  { %v433_v18 = vmul.f32 %v1517_v7, %v412_v26  ;;  %v595_v7 = vld [vmem:[%s1767_s3 + $0x8] sm:$0xff] }
 0x169   :  { %v449_v60 = vadd.f32 %v433_v18, %v349_v42 }
 0x16b   :  { %v529_v33 = vpop.permute.xlu1 %528 }
 0x16c   :  { %v558_v34 = vadd.f32 %v529_v33, %v1631_v52 }
 0x16e   :  { %v574_v44 = vmul.f32 0.01, %v558_v34 }
 0x16f   :  { %v539_v45 = vpop.permute.xlu1 %538 }
 0x170   :  { %v590_v59 = vmax.f32 %v558_v34, %v574_v44  ;;  %v560_v12 = vadd.f32 %v539_v45, %v448_v40 }
 0x172   :  { %v1149_v28 = vpack.c.bf16 %v591_v29, %v590_v59  ;;  %v576_v46 = vmul.f32 0.01, %v560_v12  ;;  %v772_v59 = vld [vmem:[%s1769_s5 + $0x8] sm:$0xff]  ;;  %v774_v29 = vld [vmem:[%s1769_s5 + $0x18] sm:$0xff] }
 0x173   :  { %v544_v57 = vpop.permute.xlu1 %543 }
 0x174   :  { %v561_v63 = vadd.f32 %v544_v57, %v449_v60  ;;  %1150 = vmatprep.subr.bf16.mxu0 %v1149_v28  ;;  %v592_v15 = vmax.f32 %v560_v12, %v576_v46  ;;  %v773_v12 = vld [vmem:[%s1769_s5 + $0x10] sm:$0xff]  ;;  %v1259_v60 = vmov 0.0|0.0   ;;  %v782_v46 = vpop.permute.xlu0 %781 }
 0x175   :  { %1152 = vmatpush3.bf16.msra.mxu0 %v1149_v28  ;;  %v1261_v28 = vmov 0.0  }
 0x176   :  { %v577_v62 = vmul.f32 0.01, %v561_v63 }
 0x177   :  { %v618_v36 = vpop.permute.xlu1 %617 }
 0x178   :  { %v593_v52 = vmax.f32 %v561_v63, %v577_v62 }
 0x17a   :  { %v1153_v25 = vpack.c.bf16 %v593_v52, %v592_v15 }
 0x17b   :  { %v628_v55 = vpop.permute.xlu1 %627 }
 0x17c   :  { %1154 = vmatprep.subr.bf16.mxu0 %v1153_v25 }
 0x17d   :  { %1156 = vmatpush3.bf16.msra.mxu0 %v1153_v25 }
 0x17f   :  { %v638_v43 = vpop.permute.xlu1 %637 }
 0x180   :  { %1081 = vmatmul.mubr.f32.vlgmr.msra.gmra.mrb[0].mxu0 %v595_v7 }
 0x181   :  { %1083 = vmatprep.mubr.f32.mxu0 %v596_v35 }
 0x183   :  { %v648_v8 = vpop.permute.xlu1 %647 }
 0x184   :  { %1084 = vmatmul.mubr.f32.gmra.mrb[2].mxu0 %v597_v47 }
 0x185   :  { %1086 = vmatprep.mubr.f32.mxu0 %v598_v50  ;;  %v792_v50 = vpop.permute.xlu0 %791 }
 0x187   :  { %v787_v57 = vpop.permute.xlu1 %786 }
 0x188   :  { %1087 = vmatmul.mubr.f32.gmra.mrb[4].mxu0 %v599_v53 }
 0x189   :  { %1089 = vmatprep.mubr.f32.mxu0 %v600_v31 }
 0x18b   :  { %v797_v7 = vpop.permute.xlu1 %796 }
 0x18c   :  { %1090 = vmatmul.mubr.f32.gmra.mrb[6].mxu0 %v601_v22 }
 0x253   :  { %v1082_v58 = vpop.f32.mrb[0].mxu0 }
 0x254   :  { %v722_v49 = vadd.f32 %v1082_v58, %v618_v36  ;;  %v716_v61 = vpop.f32.mrb[1].mxu0 }
 0x255   :  { %v717_v2 = vadd.f32 %v716_v61, %v613_v54 }
 0x256   :  { %v756_v19 = vmul.f32 0.01, %v722_v49 }
 0x257   :  { %v755_v6 = vmul.f32 0.01, %v717_v2  ;;  %v1085_v11 = vpop.f32.mrb[2].mxu0 }
 0x258   :  { %v764_v16 = vmax.f32 %v722_v49, %v756_v19  ;;  %v732_v51 = vadd.f32 %v1085_v11, %v628_v55  ;;  %v726_v5 = vpop.f32.mrb[3].mxu0  ;;  %v910_v19 = vpop.permute.xlu0 %909 }
 0x259   :  { %v763_v23 = vmax.f32 %v717_v2, %v755_v6  ;;  %v727_v4 = vadd.f32 %v726_v5, %v623_v56  ;;  %v905_v2 = vld [vmem:[%s1771_s7] sm:$0x3] }
 0x25a   :  { %v758_v38 = vmul.f32 0.01, %v732_v51 }
 0x25b   :  { %v757_v13 = vmul.f32 0.01, %v727_v4  ;;  %v1088_v39 = vpop.f32.mrb[4].mxu0  ;;  %v1157_v14 = vpack.c.bf16 %v764_v16, %v763_v23 }
 0x25c   :  { %v766_v10 = vmax.f32 %v732_v51, %v758_v38  ;;  %v742_v21 = vadd.f32 %v1088_v39, %v638_v43  ;;  %v736_v20 = vpop.f32.mrb[5].mxu0 }
 0x25d   :  { %v765_v17 = vmax.f32 %v727_v4, %v757_v13  ;;  %v737_v26 = vadd.f32 %v736_v20, %v633_v48  ;;  %1158 = vmatprep.subr.bf16.mxu1 %v1157_v14 }
 0x25e   :  { %v760_v24 = vmul.f32 0.01, %v742_v21  ;;  %1160 = vmatpush3.bf16.msra.mxu1 %v1157_v14 }
 0x25f   :  { %v759_v30 = vmul.f32 0.01, %v737_v26  ;;  %v1091_v0 = vpop.f32.mrb[6].mxu0  ;;  %v1161_v32 = vpack.c.bf16 %v766_v10, %v765_v17 }
 0x260   :  { %v768_v33 = vmax.f32 %v742_v21, %v760_v24  ;;  %v752_v9 = vadd.f32 %v1091_v0, %v648_v8  ;;  %v746_v3 = vpop.f32.mrb[7].mxu0 }
 0x261   :  { %v767_v27 = vmax.f32 %v737_v26, %v759_v30  ;;  %v747_v34 = vadd.f32 %v746_v3, %v643_v1  ;;  %1162 = vmatprep.subr.bf16.mxu1 %v1161_v32 }
 0x262   :  { %v762_v37 = vmul.f32 0.01, %v752_v9  ;;  %1164 = vmatpush3.bf16.msra.mxu1 %v1161_v32 }
 0x263   :  { %v761_v18 = vmul.f32 0.01, %v747_v34  ;;  %v1165_v44 = vpack.c.bf16 %v768_v33, %v767_v27 }
 0x264   :  { %v770_v40 = vmax.f32 %v752_v9, %v762_v37 }
 0x265   :  { %v769_v45 = vmax.f32 %v747_v34, %v761_v18  ;;  %1166 = vmatprep.subr.bf16.mxu1 %v1165_v44 }
 0x266   :  { %1168 = vmatpush3.bf16.msra.mxu1 %v1165_v44 }
 0x267   :  { %v1169_v42 = vpack.c.bf16 %v770_v40, %v769_v45 }
 0x269   :  { %1170 = vmatprep.subr.bf16.mxu1 %v1169_v42 }
 0x26a   :  { %1172 = vmatpush3.bf16.msra.mxu1 %v1169_v42 }
 0x26b   :  { %1173 = vmatprep.subr.bf16.mxu1 %v1259_v60 }
 0x26d   :  { %1109 = vmatmul.mubr.msk.f32.vlgmr.msra.gmra.mrb[0].mxu1 %vm799_vm0, %v772_v59 }
 0x26e   :  { %1111 = vmatprep.mubr.msk.f32.mxu1 %vm799_vm0, %v773_v12 }
 0x271   :  { %1112 = vmatmul.mubr.msk.f32.gmra.mrb[2].mxu1 %vm799_vm0, %v774_v29 }
 0x272   :  { %1122 = vmatprep.mubr.msk.f32.mxu1 %vm1260_vm1, %v1261_v28 }
 0x340   :  { %v1110_v63 = vpop.f32.mrb[0].mxu1 }
 0x341   :  { %v884_v62 = vadd.f32 %v1110_v63, %v787_v57  ;;  %v878_v15 = vpop.f32.mrb[1].mxu1 }
 0x342   :  { %v879_v52 = vadd.f32 %v878_v15, %v782_v46 }
 0x343   :  { %v898_v25 = vmul.f32 0.01, %v884_v62 }
 0x344   :  { %v897_v35 = vmul.f32 0.01, %v879_v52  ;;  %v1113_v47 = vpop.f32.mrb[2].mxu1 }
 0x345   :  { %v902_v53 = vmax.f32 %v884_v62, %v898_v25  ;;  %v894_v31 = vadd.f32 %v1113_v47, %v797_v7  ;;  %v888_v22 = vpop.f32.mrb[3].mxu1 }
 0x346   :  { %v901_v41 = vmax.f32 %v879_v52, %v897_v35  ;;  %v889_v36 = vadd.f32 %v888_v22, %v792_v50 }
 0x347   :  { %v900_v54 = vmul.f32 0.01, %v894_v31 }
 0x348   :  { %v1174_v55 = vpack.c.bf16 %v902_v53, %v901_v41  ;;  %v899_v58 = vmul.f32 0.01, %v889_v36 }
 0x349   :  { %v904_v56 = vmax.f32 %v894_v31, %v900_v54 }
 0x34a   :  { %v903_v49 = vmax.f32 %v889_v36, %v899_v58  ;;  %1175 = vmatpush3.bf16.msra.mxu1 %v1174_v55 }
 0x34b   :  { %1176 = vmatprep.subr.bf16.mxu1 %v1259_v60 }
 0x34c   :  { %v1177_v61 = vpack.c.bf16 %v904_v56, %v903_v49 }
 0x34e   :  { %1178 = vmatpush3.bf16.msra.mxu1 %v1177_v61 }
 0x351   :  { %1123 = vmatmul.mubr.msk.f32.vlgmr.msra.gmra.mrb[4].mxu1 %vm912_vm2, %v905_v2 }
 0x424   :  { %v982_v6 = vpop.f32.mrb[4].mxu1 }
 0x425   :  { %v983_v11 = vadd.f32 %v982_v6, %v910_v19  ;;  %v1124_v16 = vpop.f32.mrb[5].mxu1 }
 0x427   :  { %1229 = vtanh.f32 %v983_v11 }
 0x431   :  { %v1230_v51 = vpop.eup %1229 }
 0x432   :  { %987 = vst [vmem:[#allocation2] sm:$0x3] %v1230_v51 }
 0x433   :  { %1242 = shalt.err (!%p1239_p4)
}
 0x434   :  { %s1243_s12 = scalar_lea.hbm %s1773_s9, 32 }
 0x435   :  { %p1244_p5 = scmp.ne.s32.totalorder %s1773_s9, %s1243_s12  ;;  %p1247_p6 = scmp.lt.u32.totalorder %s1243_s12, %s1773_s9 }
 0x437   :  { %p1249_p7 = pnand %p1247_p6, %p1244_p5 }
 0x439   :  { %1252 = shalt.err (!%p1249_p7)
}
 0x43a   :  { %997 = dma.vmem_to_hbm [thread:$0]  %s995_s10, 32, %s1773_s9, [#allocation3]  }
 0x43b   :  { %1253 = dma.done.wait [#allocation3], 32  }
 0x43c   :  { %1254 = vsyncadd [#allocation3], 4294967264 }
 0x43d   :  { %1001 = vsyncpa [#allocation3], 1 }

</bundles_post_ra>
